<compile_context>
chip_gen: v7x
topology: tpu7x:2x2x1
jax: 0.10.0
libtpu: 0.0.40
codegen_flags: <defaults>
</compile_context>

<pallas_src>
import functools

import jax
import jax.numpy as jnp
from jax.experimental import pallas as pl
from jax.experimental.pallas import tpu as pltpu


def _intensity_kernel(r_ref, x_ref, o_ref, *, scale):
    """r_ref: (B,) f32 in SMEM; x_ref/o_ref: (1, TR, L) VMEM tile of batch b."""
    b = pl.program_id(0)
    r = r_ref[b]                                           # f32 scalar from SMEM
    noise = 1.0 + scale * jnp.clip(r, -2.0, 2.0)           # noise math in f32
    o_ref[...] = x_ref[...] * noise.astype(o_ref.dtype)    # native-dtype multiply


def _hw_tile_params():
    """Generation-aware (input_tile_byte_target, vmem_limit_bytes)."""
    vmem_bytes = 0
    try:
        info = pltpu.get_tpu_info()
        vmem_bytes = int(getattr(info, "vmem_capacity_bytes", 0) or 0)
    except Exception:
        pass  # no TPU info available -> conservative defaults below
    if vmem_bytes and vmem_bytes <= (64 << 20):
        # v7x: 64 MiB physical VMEM; big tiles, 2in+2out buffers ~16 MiB + headroom.
        return (4 << 20), (44 << 20)
    # v5e / v6e (128 MiB physical; v5e default scoped limit is 16 MiB).
    return (2 << 20), (24 << 20)


def _pick_layout(chw_p):
    """chw_p is a multiple of 128 -> (L, R): L a multiple of 128, R = chw_p // L.
    Prefer layouts with R >= 8 so full tiles use all 8 sublanes of each vreg."""
    for L in (1024, 512, 256, 128):
        if chw_p % L == 0 and chw_p // L >= 8:
            return L, chw_p // L
    return 128, chw_p // 128


def intensity(x, r, scale):
    """x: (B, C, H, W); r: (B,) standard-normal samples.
    Returns x * (1 + scale * clip(r, -2, 2)) with x's dtype."""
    B, C, H, W = x.shape
    chw = C * H * W
    scale = float(scale)
    itemsize = jnp.dtype(x.dtype).itemsize
    r_f32 = r.reshape(B).astype(jnp.float32)

    # Lane-dense layout: pad the flattened per-batch axis to a multiple of 128.
    chw_p = ((chw + 127) // 128) * 128
    x_flat = x.reshape(B, chw)
    if chw_p != chw:
        x_flat = jnp.pad(x_flat, ((0, 0), (0, chw_p - chw)))
    L, R = _pick_layout(chw_p)
    x3 = x_flat.reshape(B, R, L)

    # Tile sizing (generation aware), rows in multiples of 8 or full-dim.
    tile_target, vmem_limit = _hw_tile_params()
    rows_target = max(8, tile_target // (L * itemsize))
    TR = min(R, max(8, (rows_target // 8) * 8))
    n_row_tiles = pl.cdiv(R, TR)
    # Guarantee >= 2 total grid steps: overlaps writeback of tile i-1 with the
    # input DMA of tile i+1 and keeps both v7x TensorCores busy even when B == 1.
    if B * n_row_tiles < 2:
        tr_half = (((R + 1) // 2 + 7) // 8) * 8
        if 0 < tr_half < R:
            TR = tr_half
            n_row_tiles = pl.cdiv(R, TR)

    out3 = pl.pallas_call(
        functools.partial(_intensity_kernel, scale=scale),
        out_shape=jax.ShapeDtypeStruct((B, R, L), x.dtype),
        grid=(B, n_row_tiles),
        in_specs=[
            # Whole r vector in SMEM: no per-step VMEM DMA just for a scalar.
            pl.BlockSpec(memory_space=pltpu.MemorySpace.SMEM),
            pl.BlockSpec((1, TR, L), lambda b, t: (b, t, 0)),
        ],
        out_specs=pl.BlockSpec((1, TR, L), lambda b, t: (b, t, 0)),
        compiler_params=pltpu.CompilerParams(
            dimension_semantics=("parallel", "parallel"),
            vmem_limit_bytes=vmem_limit),
    )(r_f32, x3)

    out_flat = out3.reshape(B, chw_p)
    if chw_p != chw:
        out_flat = out_flat[:, :chw]
    return out_flat.reshape(B, C, H, W)


def intensity_forward(x, key, scale):
    """Matches Intensity.forward semantics: samples r ~ N(0,1) per batch element."""
    # TODO(synk): PyTorch samples with torch.randn inside forward; here the sampling
    # uses jax.random in the wrapper (outside the Pallas kernel).
    r = jax.random.normal(key, (x.shape[0],), dtype=jnp.float32)
    return intensity(x, r, scale)


if __name__ == "__main__":
    key = jax.random.PRNGKey(0)
    kx, kr, kx2, kr2, kx3, kr3 = jax.random.split(key, 6)
    scale = 0.1

    def ref(xv, rv):
        noise = 1.0 + scale * jnp.clip(rv, -2.0, 2.0)
        return xv * noise.reshape(-1, 1, 1, 1)

    # Small module-scale shape: chw = 1024 -> dense (B, 8, 128) slab, grid (2, 1).
    B, C, H, W = 2, 4, 16, 16
    x = jax.random.normal(kx, (B, C, H, W), dtype=jnp.float32)
    r = jax.random.normal(kr, (B,), dtype=jnp.float32)   # torch.randn((B,1,1,1)) analogue
    out = jax.block_until_ready(intensity(x, r, scale))
    assert out.shape == x.shape and out.dtype == x.dtype
    assert jnp.allclose(out, ref(x, r), atol=1e-6, rtol=1e-6)

    # Non-128-multiple chw (3*5*7 = 105): exercises the pad-and-slice path.
    x_odd = jax.random.normal(kx2, (2, 3, 5, 7), dtype=jnp.float32)
    r_odd = jax.random.normal(kr2, (2,), dtype=jnp.float32)
    out_odd = jax.block_until_ready(intensity(x_odd, r_odd, scale))
    assert out_odd.shape == x_odd.shape
    assert jnp.allclose(out_odd, ref(x_odd, r_odd), atol=1e-6, rtol=1e-6)

    # Larger bf16 shape: exercises multi-row layout + native-dtype multiply.
    x_big = jax.random.normal(kx3, (2, 32, 64, 64), dtype=jnp.bfloat16)
    r_big = jax.random.normal(kr3, (2,), dtype=jnp.float32)
    out_big = jax.block_until_ready(intensity(x_big, r_big, scale))
    assert out_big.shape == x_big.shape and out_big.dtype == jnp.bfloat16
    assert jnp.allclose(out_big.astype(jnp.float32),
                        ref(x_big.astype(jnp.float32), r_big),
                        atol=2e-2, rtol=2e-2)

    # Forward API that samples r internally (semantics of Intensity.forward).
    _ = jax.block_until_ready(intensity_forward(x, jax.random.PRNGKey(1), scale))

    print("KERNEL_OK")
</pallas_src>

<mosaic_0001>
module attributes {stable_mosaic.version = 11 : i64} {
  func.func @_intensity_kernel(%arg0: i32, %arg1: i32, %arg2: memref<2xf32, #tpu.memory_space<smem>>, %arg3: memref<1x8x128xf32, #tpu.memory_space<vmem>>, %arg4: memref<1x8x128xf32, #tpu.memory_space<vmem>>) attributes {dimension_semantics = [#tpu.dimension_semantics<parallel>, #tpu.dimension_semantics<parallel>], iteration_bounds = array<i64: 2, 1>, scalar_prefetch = 0 : i64, scratch_operands = 0 : i64, tpu.core_type = #tpu.core_type<tc>, window_params = [{transform_indices = @transform_0, window_bounds = array<i64: 2>}, {transform_indices = @transform_1, window_bounds = array<i64: 1, 8, 128>}, {transform_indices = @transform_2, window_bounds = array<i64: 1, 8, 128>}]} {
    %0 = arith.index_cast %arg0 : i32 to index
    %1 = memref.load %arg2[%0] : memref<2xf32, #tpu.memory_space<smem>>
    %cst = arith.constant -2.000000e+00 : f32
    %cst_0 = arith.constant 2.000000e+00 : f32
    %2 = arith.maximumf %cst, %1 : f32
    %3 = arith.minimumf %cst_0, %2 : f32
    %cst_1 = arith.constant 1.000000e-01 : f32
    %4 = arith.mulf %cst_1, %3 : f32
    %cst_2 = arith.constant 1.000000e+00 : f32
    %5 = arith.addf %cst_2, %4 : f32
    %c0 = arith.constant 0 : index
    %c0_3 = arith.constant 0 : index
    %c0_4 = arith.constant 0 : index
    %6 = vector.load %arg3[%c0, %c0_3, %c0_4] : memref<1x8x128xf32, #tpu.memory_space<vmem>>, vector<1x8x128xf32>
    %7 = vector.broadcast %5 : f32 to vector<1x8x128xf32>
    %8 = arith.mulf %6, %7 : vector<1x8x128xf32>
    %c0_5 = arith.constant 0 : index
    %c0_6 = arith.constant 0 : index
    %c0_7 = arith.constant 0 : index
    %9 = vector.load %arg4[%c0_5, %c0_6, %c0_7] : memref<1x8x128xf32, #tpu.memory_space<vmem>>, vector<1x8x128xf32>
    tpu.vector_store %arg4[%c0_5, %c0_6, %c0_7], %8 {strides = array<i32>} : memref<1x8x128xf32, #tpu.memory_space<vmem>>, vector<1x8x128xf32>,
    return
  }
  func.func @transform_0(%arg0: i32, %arg1: i32) -> i32 {
    %c0_i32 = arith.constant 0 : i32
    %c0_i32_0 = arith.constant 0 : i32
    return %c0_i32 : i32
  }
  func.func @transform_1(%arg0: i32, %arg1: i32) -> (i32, i32, i32) {
    %c0_i32 = arith.constant 0 : i32
    %c0_i32_0 = arith.constant 0 : i32
    return %arg0, %arg1, %c0_i32 : i32, i32, i32
  }
  func.func @transform_2(%arg0: i32, %arg1: i32) -> (i32, i32, i32) {
    %c0_i32 = arith.constant 0 : i32
    %c0_i32_0 = arith.constant 0 : i32
    return %arg0, %arg1, %c0_i32 : i32, i32, i32
  }
}

</mosaic_0001>

<bundles_post_ra>
// kernel: tpu_custom_call.1
= control target key start
LH: loop header
LB: loop body
LE: loop exit
PB: predicated region body
PF: predicated region fallthrough
CT: control target
= control target key end

     0   :  { %7 = vsyncpa [#allocation5], 0  ;;  %s772_s0 = inlined_call_operand.hbm [shape: f32[2], index: 0, kind: input, shape index: {}]   ;;  %s773_s1 = inlined_call_operand.hbm [shape: f32[2,8,128], index: 1, kind: input, shape index: {}]   ;;  %s774_s2 = inlined_call_operand.hbm [shape: f32[2,8,128], index: 2, kind: output, shape index: {}]  }
   0x1   :  { %8 = vsyncpa [#allocation3], 0 }
   0x2   :  { %10 = vsyncpa [#allocation3 + $0x1], 0 }
   0x3   :  { %11 = vsyncpa [#allocation4], 0 }
   0x4   :  { %13 = vsyncpa [#allocation4 + $0x1], 0  ;;  %s545_s9 = smov 0   ;;  %s547_s10 = smov 0  }
   0x5   :  { %s549_s11 = smov 0   ;;  %s551_s12 = smov 0  }
   0x6   :  { %s553_s13 = smov 0   ;;  %s555_s14 = smov 0  }
   0x7 LB: > { %s304_s15 = sadd.s32 4294967295, %s523_s14   ;;  %s305_s16 = sadd.s32 4294967294, %s523_s14   ;;  %s523_s14 = sphi %s555_s14, %s19_s14   ;;  %s519_s13 = sphi %s553_s13, %s798_s13   ;;  %s515_s12 = sphi %s551_s12, %s797_s12   ;;  %s511_s11 = sphi %s549_s11, %s796_s11   ;;  %s507_s10 = sphi %s547_s10, %s795_s10   ;;  %s503_s9 = sphi %s545_s9, %s794_s9  }
   0x8   : > { %p74_p0 = scmp.ne.s32.totalorder %s507_s10, %s503_s9  ;;  %p579_p1 = scmp.eq.s32.totalorder %s304_s15, 0 }
   0x9   : > { %p583_p2 = scmp.eq.s32.totalorder %s304_s15, 1  ;;  %p106_p3 = scmp.eq.s32.totalorder %s305_s16, 1 }
   0xa   : > { %s779_s17 = scalar_select %p579_p1, 1, 0 }
   0xb   : > { %p589_p4 = por %p579_p1, %p74_p0  ;;  %p306_p5 = scmp.ge.s32.totalorder %s523_s14, 1 }
   0xc   : > { %p594_p6 = por %p106_p3, %p74_p0  ;;  %p113_p7 = scmp.lt.s32.totalorder %s523_s14, 3 }
   0xd   : > { %s781_s19 = scalar_select %p589_p4, 1, 0 }
   0xe   : > { %s782_s20 = scalar_select %p594_p6, 1, 0 }
   0xf   : > { %p599_p8 = pnand %p306_p5, %p113_p7  ;;  %s31_s22 = sadd.s32 1, %s519_s13 }
  0x10   : > { %p613_p12 = scmp.ge.s32.totalorder %s31_s22, 2  ;;  %s61_s25 = sadd.s32 1, %s511_s11 }
  0x11   : > { %p327_p10 = pneg %p599_p8  ;;  %p68_p13 = scmp.ne.s32.totalorder %s511_s11, %s507_s10 }
  0x12   : > { %p69_p0 = scmp.eq.s32.totalorder %s523_s14, 0  ;;  %s394_s28 = scalar_lea.hbm %s772_s0, 16 }
  0x13   : > { %p609_p11 = pnand %p327_p10, %p579_p1  ;;  %p395_p3 = scmp.ne.s32.totalorder %s772_s0, %s394_s28 }
  0x14   : > { %p401_p9 = scmp.lt.u32.totalorder %s394_s28, %s772_s0 }
  0x15   : > { %p396_p5 = pneg %p609_p11 }
  0x17   : > { %p397_p7 = pnand %p396_p5, %p395_p3 }
  0x19   : > { %p398_p10 = pneg %p397_p7 }
  0x1b   : > { %p403_p6 = pnand %p401_p9, %p398_p10 }
  0x1d   : > { %406 = shalt.err (!%p403_p6)
}
  0x1e   : > { %s525_s5 = smov [#allocation2]   ;;  %s800_s22 = smov (%p613_p12, %s31_s22), 0 }
  0x1f   : > { %330 = dma.hbm_to_smem (!%p609_p11), %s772_s0, 16, %s525_s5, [#allocation5]  }
  0x20   : > { %p644_p6 = por %p69_p0, %p68_p13  ;;  %p653_p9 = por %p583_p2, %p68_p13 }
  0x21   : > { %s56_s16 = ssub.s32 %s519_s13, %s800_s22  ;;  %p340_p3 = scmp.lt.s32.totalorder %s523_s14, 2 }
  0x22   : > { %s787_s15 = scalar_select %p653_p9, 1, 0 }
  0x23   : > { %p59_p5 = scmp.eq.s32.totalorder %s56_s16, 0  ;;  %s135_s23 = sand.u32 1, %s511_s11  }
  0x24   : > { %s309_s24 = sshll.u32 %s135_s23, 3  ;;  %s310_s27 = sshll.u32 %s519_s13, 7 }
  0x25   : > { %s662_s26 = scalar_select %p59_p5, %s511_s11, %s61_s25  }
  0x26   : > { %s668_s30 = scalar_lea.hbm %s773_s1, %s310_s27  ;;  %s139_s18 = scalar_lea.vmem [#allocation6], %s309_s24 }
  0x27   : > { %s147_s3 = sshll.u32 %s139_s18, 4  ;;  %p674_p2 = pnand %p340_p3, %p644_p6  ;;  %s670_s3 = int_to_ptr.vmem [resolvable:$true] %s147_s3 }
  0x28   : > { %s136_s25 = scalar_lea.sflag [#allocation3], %s135_s23  ;;  %s407_s5 = scalar_lea.hbm %s668_s30, 128 }
  0x29   : > { %p408_p11 = scmp.ne.s32.totalorder %s668_s30, %s407_s5  ;;  %p409_p12 = pneg %p674_p2 }
  0x2a   : > { %s412_s16 = scalar_lea.hbm %s773_s1, 256  ;;  %p413_p7 = scmp.lt.u32.totalorder %s668_s30, %s773_s1 }
  0x2b   : > { %p410_p13 = pnand %p409_p12, %p408_p11  ;;  %p414_p10 = scmp.lt.u32.totalorder %s412_s16, %s407_s5 }
  0x2c   : > { %p416_p3 = scmp.lt.u32.totalorder %s407_s5, %s668_s30 }
  0x2d   : > { %p411_p0 = pneg %p410_p13  ;;  %p415_p6 = por %p414_p10, %p413_p7 }
  0x2f   : > { %p417_p5 = por %p416_p3, %p415_p6 }
  0x31   : > { %p418_p9 = pnand %p417_p5, %p411_p0 }
  0x33   : > { %421 = shalt.err (!%p418_p9)
}
  0x34   : > { %s422_s23 = scalar_lea.vmem %s670_s3, 128  ;;  %s526_s27 = smov [#allocation6]  }
  0x35   : > { %p423_p11 = scmp.ne.s32.totalorder %s670_s3, %s422_s23  ;;  %s427_s28 = sshll.u32 %s526_s27, 4  ;;  %s428_s28 = int_to_ptr.vmem [resolvable:$false] %s427_s28 }
  0x36   : > { %s429_s29 = scalar_lea.vmem %s428_s28, 256  ;;  %p430_p1 = scmp.lt.s32.totalorder %s670_s3, %s428_s28 }
  0x37   : > { %p425_p13 = pnand %p423_p11, %p409_p12  ;;  %p431_p7 = scmp.lt.s32.totalorder %s429_s29, %s422_s23 }
  0x39   : > { %p426_p4 = pneg %p425_p13  ;;  %p432_p10 = por %p431_p7, %p430_p1 }
  0x3b   : > { %p433_p6 = pnand %p432_p10, %p426_p4 }
  0x3d   : > { %436 = shalt.err (!%p433_p6)
}
  0x3e   : > { %334 = dma.hbm_to_vmem [thread:$0]  (!%p674_p2), %s668_s30, 128, %s670_s3, %s136_s25  }
  0x3f   : > { %156 = sbr.rel (%p599_p8) target bundleno = 106 (0x6a), region = 28  ;;  %p789_p9 = scmp.ne.s32.totalorder (!%p599_p8), %s779_s17, 0 }
  0x46   : > { %490 = dma.done.wait (%p789_p9), [#allocation5], 16  }
  0x47   : > { %492 = vsyncadd (%p789_p9), [#allocation5], 4294967280  ;;  %s710_s18 = sand.u32 1, %s507_s10   ;;  %p790_p1 = scmp.ne.s32.totalorder %s781_s19, 0 }
  0x48   : > { %s313_s5 = sshll.u32 %s710_s18, 3  ;;  %s163_s4 = scalar_lea.sflag [#allocation3], %s710_s18 }
  0x49   : > { %s166_s6 = scalar_lea.vmem [#allocation6], %s313_s5 }
  0x4a   : > { %494 = dma.done.wait (%p790_p1), %s163_s4, 128  }
  0x4b   : > { %496 = vsyncadd (%p790_p1), %s163_s4, 4294967168 }
  0x4c   : > { %171 = sfence }
  0x4d   : > { %s188_s21 = sld [smem:[#allocation2 + %s515_s12]]  ;;  %s527_s17 = smov -2.0   ;;  %v193_v0 = vld [vmem:[%s166_s6] sm:$0xff] }
  0x4e   : > { %s528_s3 = smov 2.0   ;;  %s187_s16 = scalar_lea.vmem [#allocation7], %s313_s5 }
  0x4f   : > { %s212_s8 = sshll.u32 %s187_s16, 4  ;;  %s316_s23 = sshll.u32 %s515_s12, 7  ;;  %s720_s8 = int_to_ptr.vmem [resolvable:$true] %s212_s8 }
  0x50   : > { %s725_s28 = scalar_lea.hbm %s774_s2, %s316_s23  ;;  %s198_s29 = scalar_lea.sflag [#allocation4], %s710_s18 }
  0x51   : > { %s437_s4 = scalar_lea.vmem %s720_s8, 128  ;;  %p791_p8 = scmp.ne.s32.totalorder %s787_s15, 0 }
  0x52   : > { %p438_p4 = scmp.ne.s32.totalorder %s720_s8, %s437_s4  ;;  %s529_s12 = smov [#allocation7]  }
  0x53   : > { %s189_s30 = smax.f32 %s527_s17, %s188_s21  ;;  %s441_s5 = sshll.u32 %s529_s12, 4  ;;  %s442_s5 = int_to_ptr.vmem [resolvable:$false] %s441_s5 }
  0x54   : > { %s190_s25 = smin.f32 %s528_s3, %s189_s30  ;;  %p439_p2 = pnand %p438_p4, %p791_p8 }
  0x55   : > { %s191_s7 = smul.f32 0.1, %s190_s25  ;;  %s443_s6 = scalar_lea.vmem %s442_s5, 256 }
  0x56   : > { %p440_p12 = pneg %p439_p2  ;;  %p444_p0 = scmp.lt.s32.totalorder %s720_s8, %s442_s5 }
  0x57   : > { %s192_s24 = sadd.f32 1.0, %s191_s7  ;;  %p445_p3 = scmp.lt.s32.totalorder %s443_s6, %s437_s4 }
  0x59   : > { %v194_v1 = vstv %s192_s24  ;;  %p446_p5 = por %p445_p3, %p444_p0 }
  0x5a   : > { %v195_v2 = vmul.f32 %v194_v1, %v193_v0 }
  0x5b   : > { %p447_p11 = pnand %p446_p5, %p440_p12 }
  0x5c   : > { %196 = vst [vmem:[%s187_s16] sm:$0xff] %v195_v2 }
  0x5d   : > { %450 = shalt.err (!%p447_p11)
}
  0x5e   : > { %s451_s18 = scalar_lea.hbm %s725_s28, 128  ;;  %s455_s30 = scalar_lea.hbm %s774_s2, 256 }
  0x5f   : > { %p452_p13 = scmp.ne.s32.totalorder %s725_s28, %s451_s18  ;;  %p456_p6 = scmp.lt.u32.totalorder %s725_s28, %s774_s2 }
  0x60   : > { %p457_p9 = scmp.lt.u32.totalorder %s455_s30, %s451_s18  ;;  %p459_p4 = scmp.lt.u32.totalorder %s451_s18, %s725_s28 }
  0x61   : > { %p453_p7 = pnand %p452_p13, %p791_p8 }
  0x62   : > { %p458_p1 = por %p457_p9, %p456_p6 }
  0x63   : > { %p454_p10 = pneg %p453_p7 }
  0x64   : > { %p460_p2 = por %p459_p4, %p458_p1 }
  0x66   : > { %p461_p12 = pnand %p460_p2, %p454_p10 }
  0x68   : > { %464 = shalt.err (!%p461_p12)
}
  0x69   : > { %325 = dma.vmem_to_hbm [thread:$0]  (%p791_p8), %s720_s8, 128, %s725_s28, %s198_s29  }
  0x6a PF: > { %s224_s7 = sand.u32 1, %s503_s9   ;;  %p792_p0 = scmp.ne.s32.totalorder %s782_s20, 0 }
  0x6b   : > { %p793_p3 = scmp.ge.s32.totalorder %s523_s14, 2  ;;  %s225_s16 = scalar_lea.sflag [#allocation4], %s224_s7 }
  0x6d   : > { %p336_p5 = pnand %p793_p3, %p792_p0 }
  0x6f   : > { %498 = dma.done.wait (!%p336_p5), %s225_s16, 128  }
  0x70   : > { %500 = vsyncadd (!%p336_p5), %s225_s16, 4294967168  ;;  %s19_s14 = sadd.s32 1, %s523_s14   ;;  %s794_s9 = smov %s507_s10 }
  0x71   : > { %p16_p11 = scmp.ge.s32.totalorder %s19_s14, 4   ;;  %s795_s10 = smov %s511_s11 }
  0x72   : > { %s796_s11 = smov %s662_s26  ;;  %s797_s12 = smov %s519_s13 }
  0x73   : > { %s798_s13 = smov %s800_s22  ;;  %18 = sbr.rel (!%p16_p11) target bundleno = 7 (0x7), region = 78 }
  0x7a   :  { %230 = vsyncpa [#allocation3], 1 }
  0x7b   :  { %232 = vsyncpa [#allocation3 + $0x1], 1 }
  0x7c   :  { %233 = vsyncpa [#allocation4], 1 }
  0x7d   :  { %235 = vsyncpa [#allocation4 + $0x1], 1 }
  0x7e   :  { %236 = vsyncpa [#allocation5], 1 }
  0x7f   :  { %238 = vsyncpa [#allocation5 + $0x1], 1 }

</bundles_post_ra>
